<compile_context>
chip_gen: v5e
topology: v5e:2x2
jax: 0.10.0
libtpu: 0.0.40
codegen_flags: <defaults>
</compile_context>

<pallas_src>
import jax
import jax.numpy as jnp
from jax.experimental import pallas as pl
from jax.experimental.pallas import tpu as pltpu


# --------------------------- Pallas kernels --------------------------------

def _poly_pixel_kernel(mask_ref, x_ref, coef_ref, rand_ref, o_ref):
    # mask_ref: (1,) scalar in SMEM
    # x_ref:    (C, T)        current (spatial-tile, batch) slab
    # coef_ref: (3, C, 1)     per-channel (a, b, c) = (w0*f0, w1*f1, w2*f2)
    # rand_ref: (C, T)        rand_mask tile (fetched once per spatial tile)
    x = x_ref[...].astype(jnp.float32)
    a = coef_ref[0]            # (C, 1) -> broadcasts along lanes
    b = coef_ref[1]
    c = coef_ref[2]
    y_poly = (a * x + b) * x + c
    m = mask_ref[0]
    # hard select == multiply-blend because if_relu is exactly {0, 1}
    o_ref[...] = jnp.where(m > rand_ref[...],
                           jnp.maximum(x, 0.0), y_poly).astype(o_ref.dtype)


def _poly_scalar_mask_kernel(mask_ref, x_ref, coef_ref, o_ref):
    # Scalar-mask path. (1 - mask) is folded into the coefficients on the
    # host, so the kernel only computes  mask*relu(x) + poly'(x).
    x = x_ref[...].astype(jnp.float32)
    a = coef_ref[0]
    b = coef_ref[1]
    c = coef_ref[2]
    y_poly = (a * x + b) * x + c
    m = mask_ref[0]
    o_ref[...] = (m * jnp.maximum(x, 0.0) + y_poly).astype(o_ref.dtype)


# ------------------------------ Module -------------------------------------

class GeneralReluPoly:
    """JAX/Pallas port of general_relu_poly (forward only)."""

    # ~2 MiB per x block: per-grid-step overhead (~0.35us) stays <~20% of the
    # block DMA on all generations, and x/rand/out double-buffered blocks stay
    # well under a 32 MiB scoped-VMEM cap (v7x physical VMEM is only 64 MiB).
    _TARGET_BLOCK_BYTES = 2 << 20

    def __init__(self, if_channel, if_pixel, weight_inits, factors,
                 num_channels, rng_key):
        if len(weight_inits) != 3:
            raise ValueError("weight_inits must be of length 3")
        if len(factors) != 3:
            raise ValueError("factors must be of length 3")
        self.if_channel = if_channel
        self.if_pixel = if_pixel
        self.num_channels = num_channels
        self.rand_mask = None
        self._rng_key = rng_key
        w_init = jnp.asarray(weight_inits, jnp.float32)
        if if_channel:
            # (num_channels, 3): every channel initialized to weight_inits
            self.weight = jnp.tile(w_init[None, :], (num_channels, 1))
        else:
            # (3,)
            self.weight = w_init
        self.factors = jnp.asarray(factors, jnp.float32)

    # ----------------------------------------------------------------------
    def _coef(self):
        """Polynomial coefficients (a, b, c).

        if_channel: shape (3, C, 1) -> per-channel, broadcasts along lanes.
        else:       shape (3, 1, 1) -> scalar, broadcasts over the whole tile
                    (also avoids a lane-padded (C,1) coef buffer in VMEM).
        The constant index_map keeps this block single-fetched across the grid.
        """
        if self.if_channel:
            a = self.weight[:, 0] * self.factors[0]
            b = self.weight[:, 1] * self.factors[1]
            c = self.weight[:, 2] * self.factors[2]
            return jnp.stack([a, b, c], axis=0).reshape(3, self.num_channels, 1)
        a = self.weight[0] * self.factors[0]
        b = self.weight[1] * self.factors[1]
        c = self.weight[2] * self.factors[2]
        return jnp.stack([a, b, c], axis=0).reshape(3, 1, 1)

    @staticmethod
    def _pick_tile_hw(hw_pad, c, itemsize, target_bytes):
        """Largest multiple of 128 dividing hw_pad with block bytes <= target."""
        q = hw_pad // 128                       # hw_pad is a multiple of 128
        max_blocks = max(1, target_bytes // (c * itemsize * 128))
        best = 1
        for d in range(1, min(q, max_blocks) + 1):
            if q % d == 0:
                best = d
        return 128 * best

    # ----------------------------------------------------------------------
    def __call__(self, x, mask):
        N, C, H, W = x.shape
        HW = H * W

        # NOTE: this Python-level check (like PyTorch's `mask is None or mask == -1`)
        # only works for concrete (non-traced) masks.
        if mask is None or (isinstance(mask, (int, float)) and mask == -1):
            # Let XLA fuse the ReLU into its producer: a standalone elementwise
            # kernel would pay a full extra HBM read + write of the tensor.
            return jnp.maximum(x, 0.0)

        itemsize = jnp.dtype(x.dtype).itemsize
        hw_pad = ((HW + 127) // 128) * 128      # lane-dense spatial extent
        tile = self._pick_tile_hw(hw_pad, C, itemsize, self._TARGET_BLOCK_BYTES)
        n_hw = hw_pad // tile

        x2 = x.reshape(N, C, HW)
        if hw_pad != HW:
            # pad once so every block is a multiple of 128 lanes (unmasked vst)
            x2 = jnp.pad(x2, ((0, 0), (0, 0), (0, hw_pad - HW)))

        out_shape = jax.ShapeDtypeStruct((N, C, hw_pad), x.dtype)

        # grid = (spatial-tile, batch): batch varies fastest, so rand/coef block
        # indices are unchanged between consecutive steps -> fetched once per
        # spatial tile. Both axes are parallel (every block is independent), so
        # a v7x megacore can shard either axis across its two TensorCores.
        grid = (n_hw, N)
        x_spec = pl.BlockSpec((None, C, tile), lambda h, n: (n, 0, h))
        smem_spec = pl.BlockSpec(memory_space=pltpu.MemorySpace.SMEM)
        cparams = pltpu.CompilerParams(
            dimension_semantics=("parallel", "parallel"),
            vmem_limit_bytes=32 << 20,
        )
        mask_arr = jnp.asarray([mask], jnp.float32)

        if self.if_pixel:
            coef = self._coef()
            coef_spec = pl.BlockSpec(coef.shape, lambda h, n: (0, 0, 0))
            if self.rand_mask is None:
                # lazily created like the PyTorch module (deterministic key)
                self.rand_mask = jax.random.uniform(
                    self._rng_key, (C, H, W), jnp.float32)
            rand2 = self.rand_mask.reshape(C, HW)
            if hw_pad != HW:
                rand2 = jnp.pad(rand2, ((0, 0), (0, hw_pad - HW)))
            rand_spec = pl.BlockSpec((C, tile), lambda h, n: (0, h))
            y2 = pl.pallas_call(
                _poly_pixel_kernel,
                out_shape=out_shape,
                grid=grid,
                in_specs=[smem_spec, x_spec, coef_spec, rand_spec],
                out_specs=x_spec,
                compiler_params=cparams,
            )(mask_arr, x2, coef, rand2)
        else:
            m = jnp.asarray(mask, jnp.float32)
            # fold (1 - mask) into the polynomial coefficients on the host
            coef = self._coef() * (1.0 - m)
            coef_spec = pl.BlockSpec(coef.shape, lambda h, n: (0, 0, 0))
            y2 = pl.pallas_call(
                _poly_scalar_mask_kernel,
                out_shape=out_shape,
                grid=grid,
                in_specs=[smem_spec, x_spec, coef_spec],
                out_specs=x_spec,
                compiler_params=cparams,
            )(mask_arr, x2, coef)

        if hw_pad != HW:
            y2 = y2[:, :, :HW]
        return y2.reshape(N, C, H, W)

    # ----------------------------------------------------------------------
    def get_relu_density(self, mask):
        if not self.if_pixel:
            raise ValueError(
                "get_relu_density can only be called when if_pixel is True")
        if_relu = mask > self.rand_mask
        total_elements = self.rand_mask.size
        relu_elements = int(jnp.sum(if_relu))
        return total_elements, relu_elements


# ------------------------------- Demo ---------------------------------------

if __name__ == "__main__":
    key = jax.random.PRNGKey(0)
    kx, km, kx2 = jax.random.split(key, 3)

    N, C, H, W = 2, 4, 16, 16
    x = jax.random.normal(kx, (N, C, H, W), jnp.float32)
    mask = 0.3

    # ---- per-channel, per-pixel path -------------------------------------
    mod = GeneralReluPoly(
        if_channel=True,
        if_pixel=True,
        weight_inits=[0.1, 0.5, 0.2],
        factors=[0.25, 1.0, 0.5],
        num_channels=C,
        rng_key=km,
    )
    y = mod(x, mask)
    jax.block_until_ready(y)

    w, f = mod.weight, mod.factors
    a = (w[:, 0] * f[0])[:, None, None]
    b = (w[:, 1] * f[1])[:, None, None]
    c = (w[:, 2] * f[2])[:, None, None]
    y_poly = (a * x + b) * x + c
    if_relu = (mask > mod.rand_mask).astype(jnp.float32)
    ref = jnp.maximum(x, 0.0) * if_relu + y_poly * (1.0 - if_relu)
    assert jnp.allclose(y, ref, atol=1e-5, rtol=1e-5), "pixel-path mismatch"

    # ---- relu-only (mask=None) path ---------------------------------------
    y_relu = mod(x, None)
    jax.block_until_ready(y_relu)
    assert jnp.allclose(y_relu, jnp.maximum(x, 0.0)), "relu path mismatch"

    # ---- scalar-weight, scalar-mask path ----------------------------------
    mod2 = GeneralReluPoly(
        if_channel=False,
        if_pixel=False,
        weight_inits=[0.1, 0.5, 0.2],
        factors=[0.25, 1.0, 0.5],
        num_channels=C,
        rng_key=km,
    )
    mask2 = 0.4
    y2 = mod2(x, mask2)
    jax.block_until_ready(y2)

    a2 = mod2.weight[0] * mod2.factors[0]
    b2 = mod2.weight[1] * mod2.factors[1]
    c2 = mod2.weight[2] * mod2.factors[2]
    y_poly2 = (a2 * x + b2) * x + c2
    ref2 = jnp.maximum(x, 0.0) * mask2 + y_poly2 * (1.0 - mask2)
    assert jnp.allclose(y2, ref2, atol=1e-5, rtol=1e-5), "scalar-path mismatch"

    # ---- pixel path with HW % 128 != 0 (ResNet 14x14-style stage) ---------
    N3, C3, H3, W3 = 2, 8, 14, 14
    x3 = jax.random.normal(kx2, (N3, C3, H3, W3), jnp.float32)
    mask3 = 0.6
    mod3 = GeneralReluPoly(
        if_channel=True,
        if_pixel=True,
        weight_inits=[0.2, 0.4, 0.1],
        factors=[0.5, 1.0, 0.25],
        num_channels=C3,
        rng_key=km,
    )
    y3 = mod3(x3, mask3)
    jax.block_until_ready(y3)

    w3, f3 = mod3.weight, mod3.factors
    a3 = (w3[:, 0] * f3[0])[:, None, None]
    b3 = (w3[:, 1] * f3[1])[:, None, None]
    c3 = (w3[:, 2] * f3[2])[:, None, None]
    y_poly3 = (a3 * x3 + b3) * x3 + c3
    if_relu3 = (mask3 > mod3.rand_mask).astype(jnp.float32)
    ref3 = jnp.maximum(x3, 0.0) * if_relu3 + y_poly3 * (1.0 - if_relu3)
    assert jnp.allclose(y3, ref3, atol=1e-5, rtol=1e-5), "padded-path mismatch"

    print("KERNEL_OK")
</pallas_src>

<mosaic_0001>
module attributes {stable_mosaic.version = 11 : i64} {
  func.func @_poly_pixel_kernel(%arg0: i32, %arg1: i32, %arg2: memref<1xf32, #tpu.memory_space<smem>>, %arg3: memref<1x4x256xf32, #tpu.memory_space<vmem>>, %arg4: memref<3x4x1xf32, #tpu.memory_space<vmem>>, %arg5: memref<4x256xf32, #tpu.memory_space<vmem>>, %arg6: memref<1x4x256xf32, #tpu.memory_space<vmem>>) attributes {dimension_semantics = [#tpu.dimension_semantics<parallel>, #tpu.dimension_semantics<parallel>], iteration_bounds = array<i64: 1, 2>, scalar_prefetch = 0 : i64, scratch_operands = 0 : i64, tpu.core_type = #tpu.core_type<tc>, window_params = [{transform_indices = @transform_0, window_bounds = array<i64: 1>}, {transform_indices = @transform_1, window_bounds = array<i64: 1, 4, 256>}, {pipeline_mode = #tpu.pipeline_mode<synchronous>, transform_indices = @transform_2, window_bounds = array<i64: 3, 4, 1>}, {transform_indices = @transform_3, window_bounds = array<i64: 4, 256>}, {transform_indices = @transform_4, window_bounds = array<i64: 1, 4, 256>}]} {
    %c0 = arith.constant 0 : index
    %c0_0 = arith.constant 0 : index
    %c0_1 = arith.constant 0 : index
    %0 = vector.load %arg3[%c0, %c0_0, %c0_1] : memref<1x4x256xf32, #tpu.memory_space<vmem>>, vector<1x4x256xf32>
    %1 = vector.shape_cast %0 : vector<1x4x256xf32> to vector<4x256xf32>
    %c0_2 = arith.constant 0 : index
    %c0_3 = arith.constant 0 : index
    %c0_4 = arith.constant 0 : index
    %2 = vector.load %arg4[%c0_2, %c0_3, %c0_4] : memref<3x4x1xf32, #tpu.memory_space<vmem>>, vector<1x4x1xf32>
    %3 = vector.shape_cast %2 : vector<1x4x1xf32> to vector<4x1xf32>
    %c1 = arith.constant 1 : index
    %c0_5 = arith.constant 0 : index
    %c0_6 = arith.constant 0 : index
    %4 = vector.load %arg4[%c1, %c0_5, %c0_6] : memref<3x4x1xf32, #tpu.memory_space<vmem>>, vector<1x4x1xf32>
    %5 = vector.shape_cast %4 : vector<1x4x1xf32> to vector<4x1xf32>
    %c2 = arith.constant 2 : index
    %c0_7 = arith.constant 0 : index
    %c0_8 = arith.constant 0 : index
    %6 = vector.load %arg4[%c2, %c0_7, %c0_8] : memref<3x4x1xf32, #tpu.memory_space<vmem>>, vector<1x4x1xf32>
    %7 = vector.shape_cast %6 : vector<1x4x1xf32> to vector<4x1xf32>
    %8 = vector.broadcast %3 : vector<4x1xf32> to vector<4x256xf32>
    %9 = arith.mulf %8, %1 : vector<4x256xf32>
    %10 = vector.broadcast %5 : vector<4x1xf32> to vector<4x256xf32>
    %11 = arith.addf %9, %10 : vector<4x256xf32>
    %12 = arith.mulf %11, %1 : vector<4x256xf32>
    %13 = vector.broadcast %7 : vector<4x1xf32> to vector<4x256xf32>
    %14 = arith.addf %12, %13 : vector<4x256xf32>
    %c0_9 = arith.constant 0 : index
    %15 = memref.load %arg2[%c0_9] : memref<1xf32, #tpu.memory_space<smem>>
    %c0_10 = arith.constant 0 : index
    %c0_11 = arith.constant 0 : index
    %16 = vector.load %arg5[%c0_10, %c0_11] : memref<4x256xf32, #tpu.memory_space<vmem>>, vector<4x256xf32>
    %17 = vector.broadcast %15 : f32 to vector<4x256xf32>
    %18 = arith.cmpf ogt, %17, %16 : vector<4x256xf32>
    %cst = arith.constant 0.000000e+00 : f32
    %19 = vector.broadcast %cst : f32 to vector<4x256xf32>
    %20 = arith.maximumf %1, %19 : vector<4x256xf32>
    %21 = arith.select %18, %20, %14 : vector<4x256xi1>, vector<4x256xf32>
    %c0_12 = arith.constant 0 : index
    %c0_13 = arith.constant 0 : index
    %c0_14 = arith.constant 0 : index
    %22 = vector.load %arg6[%c0_12, %c0_13, %c0_14] : memref<1x4x256xf32, #tpu.memory_space<vmem>>, vector<1x4x256xf32>
    %23 = vector.shape_cast %22 : vector<1x4x256xf32> to vector<4x256xf32>
    %24 = vector.shape_cast %21 : vector<4x256xf32> to vector<1x4x256xf32>
    tpu.vector_store %arg6[%c0_12, %c0_13, %c0_14], %24 {strides = array<i32>} : memref<1x4x256xf32, #tpu.memory_space<vmem>>, vector<1x4x256xf32>,
    return
  }
  func.func @transform_0(%arg0: i32, %arg1: i32) -> i32 {
    %c0_i32 = arith.constant 0 : i32
    %c0_i32_0 = arith.constant 0 : i32
    return %c0_i32 : i32
  }
  func.func @transform_1(%arg0: i32, %arg1: i32) -> (i32, i32, i32) {
    %c0_i32 = arith.constant 0 : i32
    %c0_i32_0 = arith.constant 0 : i32
    return %arg1, %c0_i32, %arg0 : i32, i32, i32
  }
  func.func @transform_2(%arg0: i32, %arg1: i32) -> (i32, i32, i32) {
    %c0_i32 = arith.constant 0 : i32
    %c0_i32_0 = arith.constant 0 : i32
    %c0_i32_1 = arith.constant 0 : i32
    %c0_i32_2 = arith.constant 0 : i32
    return %c0_i32, %c0_i32_0, %c0_i32_1 : i32, i32, i32
  }
  func.func @transform_3(%arg0: i32, %arg1: i32) -> (i32, i32) {
    %c0_i32 = arith.constant 0 : i32
    %c0_i32_0 = arith.constant 0 : i32
    return %c0_i32, %arg0 : i32, i32
  }
  func.func @transform_4(%arg0: i32, %arg1: i32) -> (i32, i32, i32) {
    %c0_i32 = arith.constant 0 : i32
    %c0_i32_0 = arith.constant 0 : i32
    return %arg1, %c0_i32, %arg0 : i32, i32, i32
  }
}

</mosaic_0001>

<bundles_post_ra>
// kernel: tpu_custom_call.1
= control target key start
LH: loop header
LB: loop body
LE: loop exit
PB: predicated region body
PF: predicated region fallthrough
CT: control target
= control target key end

     0   :  { %s759_s0 = inlined_call_operand.<no memory space> [shape: f32[1], index: 0, kind: input, shape index: {}]   ;;  %s760_s1 = inlined_call_operand.vmem [shape: f32[2,4,256], index: 1, kind: input, shape index: {}]   ;;  %s761_s2 = inlined_call_operand.vmem [shape: f32[3,4,1], index: 2, kind: input, shape index: {}]   ;;  %s762_s3 = inlined_call_operand.hbm [shape: f32[4,256], index: 3, kind: input, shape index: {}]   ;;  %s763_s4 = inlined_call_operand.hbm [shape: f32[2,4,256], index: 4, kind: output, shape index: {}]  }
   0x1   :  { %9 = sst [smem:[#allocation2]] %s759_s0 }
   0x2   :  { %10 = vsyncpa [#allocation4], 0 }
   0x3   :  { %11 = vsyncpa [#allocation5], 0 }
   0x4   :  { %13 = vsyncpa [#allocation5 + $0x1], 0  ;;  %s646_s17 = smov 0   ;;  %s648_s18 = smov 0  }
   0x5   :  { %s650_s19 = smov 0   ;;  %s652_s20 = smov 0  }
   0x6   :  { %s654_s21 = smov 0   ;;  %s656_s22 = smov 0  }
   0x7 LB: > { %s414_s0 = sadd.s32 4294967295, %s614_s22   ;;  %s415_s23 = sadd.s32 4294967294, %s614_s22   ;;  %s614_s22 = sphi %s656_s22, %s19_s22   ;;  %s610_s21 = sphi %s654_s21, %s770_s21   ;;  %s606_s20 = sphi %s652_s20, %s769_s20   ;;  %s602_s19 = sphi %s650_s19, %s768_s19   ;;  %s598_s18 = sphi %s648_s18, %s767_s18   ;;  %s594_s17 = sphi %s646_s17, %s766_s17  }
   0x8   : > { %s28_s24 = sadd.s32 1, %s610_s21  ;;  %s136_s25 = sadd.s32 1, %s602_s19 }
   0x9   : > { %p29_p0 = scmp.ge.s32.totalorder %s28_s24, 2  ;;  %p146_p1 = scmp.ne.s32.totalorder %s602_s19, %s598_s18 }
   0xa   : > { %p147_p2 = scmp.eq.s32.totalorder %s414_s0, 1  ;;  %p152_p3 = scmp.ne.s32.totalorder %s598_s18, %s594_s17 }
   0xb   : > { %s772_s24 = smov (%p29_p0, %s28_s24), 0  ;;  %p153_p5 = scmp.eq.s32.totalorder %s415_s23, 1 }
   0xc   : > { %p686_p4 = por %p147_p2, %p146_p1  ;;  %s131_s27 = ssub.s32 %s610_s21, %s772_s24 }
   0xd   : > { %p416_p6 = scmp.ge.s32.totalorder %s614_s22, 1  ;;  %p134_p7 = scmp.eq.s32.totalorder %s131_s27, 0 }
   0xe   : > { %p693_p8 = por %p153_p5, %p152_p3  ;;  %p160_p9 = scmp.lt.s32.totalorder %s614_s22, 3 }
   0xf   : > { %s699_s29 = scalar_select %p134_p7, %s602_s19, %s136_s25  }
  0x10   : > { %p161_p10 = pnand %p416_p6, %p160_p9  ;;  %p447_p11 = scmp.eq.s32.totalorder %s414_s0, 0 }
  0x11   : > { %s181_s6 = sshll.u32 %s762_s3, 4  ;;  %s616_s7 = smov [#allocation3]   ;;  %s182_s6 = int_to_ptr.hbm [resolvable:$true] %s181_s6 }
  0x12   : > { %p439_p12 = pneg %p161_p10  ;;  %s183_s8 = sshll.u32 %s616_s7, 4  ;;  %s184_s8 = int_to_ptr.vmem [resolvable:$true] %s183_s8 }
  0x13   : > { %209 = sbr.rel (%p161_p10) target bundleno = 163 (0xa3), region = 36 }
  0x14   : > { %p440_p13 = pnand %p447_p11, %p439_p12 }
  0x16   : > { %442 = dma.hbm_to_vmem [thread:$0]  (!%p440_p13), %s182_s6, 128, %s184_s8, [#allocation4]  }
  0x18   : > { %585 = dma.done.wait (%p447_p11), [#allocation4], 128  }
  0x19   : > { %587 = vsyncadd (%p447_p11), [#allocation4], 4294967168  ;;  %v617_v0 = vmov 0   ;;  %v253_v1 = vld [vmem:[%s761_s2] sm:$0xf]  ;;  %p241_p0 = scmp.lt.s32.totalorder %s606_s20, 1 }
  0x1a   : > { %500 = vset.pattern.permute.xlu0 %v617_v0  ;;  %501 = vset.pattern.permute.xlu1 %v617_v0  ;;  %v425_v2 = vld [vmem:[%s761_s2 + $0x8] sm:$0xf]  ;;  %v424_v3 = vld [vmem:[%s761_s2 + $0x4] sm:$0xf]  ;;  %s292_s27 = sld [smem:[#allocation2]]  ;;  %s237_s30 = sand.u32 1, %s598_s18  }
  0x1b   : > { %260 = vperm.xlu0 %500, %v253_v1   ;;  %287 = vperm.xlu1 %501, %v425_v2   ;;  %s242_s15 = scalar_select %p241_p0, %s606_s20, 1  ;;  %v293_v18 = vld [vmem:[#allocation3] sm:$0xff]  ;;  %vm300_vm0 = vcmask 1043456  }
  0x1c   : > { %s421_s5 = sshll.u32 %s237_s30, 3  ;;  %s432_s6 = sshll.u32 %s606_s20, 3 }
  0x1d   : > { %s431_s16 = sshll.u32 %s242_s15, 3  ;;  %s319_s9 = scalar_lea.hbm %s763_s4, %s432_s6 }
  0x1e   : > { %s248_s25 = scalar_lea.vmem %s760_s1, %s431_s16  ;;  %s239_s10 = scalar_lea.vmem [#allocation6], %s421_s5 }
  0x1f   : > { %v252_v4 = vld [vmem:[%s248_s25] sm:$0xff]  ;;  %s321_s20 = sshll.u32 %s239_s10, 4  ;;  %s323_s11 = sshll.u32 %s319_s9, 4  ;;  %s322_s20 = int_to_ptr.vmem [resolvable:$true] %s321_s20  ;;  %s324_s11 = int_to_ptr.hbm [resolvable:$true] %s323_s11 }
  0x20   : > { %264 = vst [vmem:[#allocation1] ss:$2 sm:$0xff] %v252_v4  ;;  %v294_v19 = vstv %s292_s27  ;;  %v296_v21 = vmax.f32 %v252_v4, 0.0  ;;  %s306_s12 = scalar_lea.sflag [#allocation5], %s237_s30  ;;  %s546_s13 = sshra.s32 %s324_s11, 4  ;;  %s547_s13 = int_to_ptr.hbm [resolvable:$true] %s546_s13 }
  0x21   : > { %vm295_vm1 = vcmp.gt.f32.partialorder %v294_v19, %v293_v18  ;;  %s548_s14 = scalar_lea.hbm %s547_s13, 8  ;;  %s552_s0 = scalar_lea.hbm %s763_s4, 16 }
  0x22   : > { %p549_p1 = scmp.ne.s32.totalorder %s547_s13, %s548_s14  ;;  %p553_p5 = scmp.lt.s32.totalorder %s547_s13, %s763_s4 }
  0x23   : > { %273 = vperm.xlu0 %500, %v424_v3   ;;  %p554_p6 = scmp.lt.s32.totalorder %s552_s0, %s548_s14 }
  0x24   : > { %p550_p2 = pnand %p549_p1, %p686_p4 }
  0x25   : > { %p555_p7 = por %p554_p6, %p553_p5 }
  0x26   : > { %p551_p3 = pneg %p550_p2 }
  0x27   : > { %v265_v5 = vld.sshfl [vmem:[#allocation1] sm:$0xff pattern:$0x75316420]  ;;  %v266_v6 = vld.sshfl [vmem:[#allocation1 + $0x8] sm:$0xff pattern:$0x75316420] }
  0x28   : > { %278 = vst [vmem:[#allocation1] ss:$2 sm:$0xff] %v252_v4  ;;  %p556_p9 = pnand %p555_p7, %p551_p3 }
  0x2f   : > { %v279_v11 = vld.sshfl [vmem:[#allocation1] sm:$0xff pattern:$0x75316420]  ;;  %v280_v12 = vld.sshfl [vmem:[#allocation1 + $0x8] sm:$0xff pattern:$0x75316420] }
  0x8d   : > { %v261_v7 = vpop.permute.xlu0 %260  ;;  %v288_v15 = vpop.permute.xlu1 %287 }
  0x8e   : > { %v269_v8 = vmul.f32 %v265_v5, %v261_v7  ;;  %v270_v9 = vmul.f32 %v266_v6, %v261_v7 }
  0x95   : > { %v274_v10 = vpop.permute.xlu0 %273 }
  0x96   : > { %v276_v13 = vadd.f32 %v274_v10, %v269_v8  ;;  %v277_v14 = vadd.f32 %v274_v10, %v270_v9 }
  0x98   : > { %v283_v16 = vmul.f32 %v279_v11, %v276_v13  ;;  %v284_v17 = vmul.f32 %v280_v12, %v277_v14 }
  0x9a   : > { %v291_v20 = vadd.f32 %v288_v15, %v284_v17  ;;  %v290_v22 = vadd.f32 %v288_v15, %v283_v16 }
  0x9c   : > { %v299_v23 = vrot.slane %v291_v20, 4 }
  0x9e   : > { %v301_v24 = vsel %vm300_vm0, %v290_v22, %v299_v23 }
  0x9f   : > { %v303_v25 = vsel %vm295_vm1, %v296_v21, %v301_v24 }
  0xa0   : > { %304 = vst [vmem:[%s239_s10] sm:$0xff] %v303_v25 }
  0xa1   : > { %559 = shalt.err (!%p556_p9)
}
  0xa2   : > { %437 = dma.vmem_to_hbm [thread:$0]  (%p686_p4), %s322_s20, 128, %s324_s11, %s306_s12  }
  0xa3 PF: > { %p449_p10 = scmp.ge.s32.totalorder %s614_s22, 2  ;;  %s335_s27 = sand.u32 1, %s594_s17  }
  0xa4   : > { %s336_s30 = scalar_lea.sflag [#allocation5], %s335_s27 }
  0xa5   : > { %p444_p11 = pnand %p449_p10, %p693_p8 }
  0xa7   : > { %p445_p12 = pneg %p444_p11 }
  0xa9   : > { %589 = dma.done.wait (%p445_p12), %s336_s30, 128  }
  0xaa   : > { %591 = vsyncadd (%p445_p12), %s336_s30, 4294967168  ;;  %s19_s22 = sadd.s32 1, %s614_s22   ;;  %s766_s17 = smov %s598_s18 }
  0xab   : > { %p16_p13 = scmp.ge.s32.totalorder %s19_s22, 4   ;;  %s767_s18 = smov %s602_s19 }
  0xac   : > { %s768_s19 = smov %s699_s29  ;;  %s769_s20 = smov %s610_s21 }
  0xad   : > { %s770_s21 = smov %s772_s24  ;;  %18 = sbr.rel (!%p16_p13) target bundleno = 7 (0x7), region = 79 }
  0xb2   :  { %342 = vsyncpa [#allocation4], 1 }
  0xb3   :  { %344 = vsyncpa [#allocation4 + $0x1], 1 }
  0xb4   :  { %345 = vsyncpa [#allocation5], 1 }
  0xb5   :  { %347 = vsyncpa [#allocation5 + $0x1], 1 }

</bundles_post_ra>
